<compile_context>
chip_gen: v7x
topology: tpu7x:2x2x1
jax: 0.10.0
libtpu: 0.0.40
codegen_flags: <defaults>
</compile_context>

<pallas_src>
import jax
import jax.numpy as jnp
from jax import lax
from jax.experimental import pallas as pl
from jax.experimental.pallas import tpu as pltpu

BN_EPS = 1e-5


def _cdiv(a, b):
    return -(-a // b)


def _round_up(a, b):
    return _cdiv(a, b) * b


def _vmem_tile_bytes(rows, cols, dtype):
    """VMEM footprint of a (rows, cols) buffer incl. (sublane, 128-lane) padding."""
    item = jnp.dtype(dtype).itemsize
    sublane = {4: 8, 2: 16, 1: 32}.get(item, 8)
    return _round_up(max(rows, 1), sublane) * _round_up(max(cols, 1), 128) * item


# --------------------------------------------------------------------------- #
# Phase 1: streamed per-graph segment sums (+counts via appended ones column). #
# --------------------------------------------------------------------------- #
def _segment_sum_kernel(nb_ref, eb_ref, x_ref, ea_ref, npart_ref, epart_ref,
                        iota_ref):
    t = pl.program_id(1)
    tn = x_ref.shape[0]
    te = ea_ref.shape[0]

    @pl.when(t == 0)
    def _init():
        # Segment iota built once per core-chunk; reused for every row tile and
        # shared (sliced) between the node and edge one-hot constructions.
        iota_ref[...] = lax.broadcasted_iota(jnp.int32, iota_ref.shape, 0)
        npart_ref[...] = jnp.zeros_like(npart_ref)
        epart_ref[...] = jnp.zeros_like(epart_ref)

    # One-hot segment matmuls on the MXU (bf16 operands, f32 accumulation).
    # Padded rows carry graph id == B, so their one-hot column is all zeros.
    # The trailing ones column of x/ea makes the last output column the count.
    node_oh = (nb_ref[...] == iota_ref[:, :tn]).astype(x_ref.dtype)     # [B, tn]
    npart_ref[...] += jnp.dot(node_oh, x_ref[...],
                              preferred_element_type=jnp.float32)       # [B, Dn+1]

    edge_oh = (eb_ref[...] == iota_ref[:, :te]).astype(ea_ref.dtype)    # [B, te]
    epart_ref[...] += jnp.dot(edge_oh, ea_ref[...],
                              preferred_element_type=jnp.float32)       # [B, De+1]


# --------------------------------------------------------------------------- #
# Phase 2: combine per-core partials -> means -> BN-folded MLP (runs once).    #
# --------------------------------------------------------------------------- #
def _combine_mlp_kernel(npart_ref, epart_ref, w1n_ref, w1e_ref, b1_ref, w2_ref,
                        b2_ref, o_ref):
    dn = w1n_ref.shape[0]
    de = w1e_ref.shape[0]

    nsum = npart_ref[0]
    esum = epart_ref[0]
    for c in range(1, npart_ref.shape[0]):      # tiny static unroll over cores
        nsum = nsum + npart_ref[c]
        esum = esum + epart_ref[c]

    # Exact divide (runs once; matches PyTorch scatter_mean semantics).
    node_mean = nsum[:, :dn] / jnp.maximum(nsum[:, dn:dn + 1], 1.0)
    edge_mean = esum[:, :de] / jnp.maximum(esum[:, de:de + 1], 1.0)

    # Split matmul == concat([node_mean, edge_mean]) @ W1 (BN folded into W1/b1).
    h = (jnp.dot(node_mean, w1n_ref[...], preferred_element_type=jnp.float32)
         + jnp.dot(edge_mean, w1e_ref[...], preferred_element_type=jnp.float32)
         + b1_ref[...])
    h = jnp.maximum(h, 0.0)                     # ReLU; dropout = identity at eval
    o_ref[...] = (jnp.dot(h, w2_ref[...], preferred_element_type=jnp.float32)
                  + b2_ref[...]).astype(o_ref.dtype)


def prepare_params(params, node_dim, eps=BN_EPS):
    """One-time parameter prep: fold eval-mode BatchNorm into layer 1, split W1."""
    scale = params["gamma1"] * lax.rsqrt(params["rv1"] + eps)           # [1, H]
    w1 = (params["w1"] * scale).astype(jnp.float32)                     # [Din, H]
    b1 = ((params["b1"] - params["rm1"]) * scale
          + params["beta1"]).astype(jnp.float32)                        # [1, H]
    return dict(
        w1n=w1[:node_dim],
        w1e=w1[node_dim:],
        b1=b1,
        w2=params["w2"].astype(jnp.float32),
        b2=params["b2"].astype(jnp.float32),
    )


def _full_spec(shape):
    nd = len(shape)
    return pl.BlockSpec(tuple(shape), lambda i, _nd=nd: (0,) * _nd)


def global_model_forward(x, edge_index, edge_attr, u, batch, prepped, num_graphs,
                         *, tile_n=16384, tile_e=16384, num_cores=1,
                         compute_dtype=jnp.bfloat16, vmem_cap_bytes=40 << 20):
    """GlobalModel.forward. `prepped` comes from prepare_params.

    num_cores: set to 2 on v7x (2 TensorCores/chip) to shard the row reduction
    across cores via the parallel leading grid axis; leave 1 on v5e/v6e.
    """
    del u  # unused by GlobalModel.forward
    N, node_dim = x.shape
    E, edge_dim = edge_attr.shape
    B = int(num_graphs)
    dn1, de1 = node_dim + 1, edge_dim + 1
    G = prepped["w2"].shape[1]

    tile_n = max(128, _round_up(int(tile_n), 128))
    tile_e = max(128, _round_up(int(tile_e), 128))
    C = max(1, int(num_cores))

    # Per-edge graph id (tiny int gather; stays in XLA outside the kernel).
    edge_batch = batch[edge_index[0]]

    # Common tile count, split across cores; padded rows carry graph id == B.
    t_total = max(_cdiv(N, tile_n), _cdiv(E, tile_e), 1)
    t_per = _cdiv(t_total, C)
    n_pad, e_pad = C * t_per * tile_n, C * t_per * tile_e

    # Append a ones column so counts fall out of the same segment-sum matmul.
    x_aug = jnp.concatenate(
        [x.astype(compute_dtype), jnp.ones((N, 1), compute_dtype)], axis=1)
    ea_aug = jnp.concatenate(
        [edge_attr.astype(compute_dtype), jnp.ones((E, 1), compute_dtype)], axis=1)
    x_p = jnp.pad(x_aug, ((0, n_pad - N), (0, 0)))
    ea_p = jnp.pad(ea_aug, ((0, e_pad - E), (0, 0)))
    nb_p = jnp.pad(batch.astype(jnp.int32).reshape(1, -1),
                   ((0, 0), (0, n_pad - N)), constant_values=B)
    eb_p = jnp.pad(edge_batch.astype(jnp.int32).reshape(1, -1),
                   ((0, 0), (0, e_pad - E)), constant_values=B)

    # VMEM budget with (sublane, 128-lane) layout padding of the narrow tiles;
    # double-buffered streams; clamped to a generation-safe cap (v7x: 64 MiB/TC).
    stream = 2 * (_vmem_tile_bytes(tile_n, dn1, compute_dtype)
                  + _vmem_tile_bytes(tile_e, de1, compute_dtype)
                  + _vmem_tile_bytes(1, tile_n, jnp.int32)
                  + _vmem_tile_bytes(1, tile_e, jnp.int32))
    outs = 2 * (_vmem_tile_bytes(B, dn1, jnp.float32)
                + _vmem_tile_bytes(B, de1, jnp.float32))
    iota = _vmem_tile_bytes(B, max(tile_n, tile_e), jnp.int32)
    vmem_limit = int(1.25 * (stream + outs + iota)) + (2 << 20)
    vmem_limit = min(max(vmem_limit, 16 << 20), int(vmem_cap_bytes))

    npart, epart = pl.pallas_call(
        _segment_sum_kernel,
        out_shape=(jax.ShapeDtypeStruct((C, B, dn1), jnp.float32),
                   jax.ShapeDtypeStruct((C, B, de1), jnp.float32)),
        grid=(C, t_per),
        in_specs=[
            pl.BlockSpec((1, tile_n), lambda c, t: (0, c * t_per + t)),   # node ids
            pl.BlockSpec((1, tile_e), lambda c, t: (0, c * t_per + t)),   # edge ids
            pl.BlockSpec((tile_n, dn1), lambda c, t: (c * t_per + t, 0)), # node feats
            pl.BlockSpec((tile_e, de1), lambda c, t: (c * t_per + t, 0)), # edge feats
        ],
        out_specs=(
            pl.BlockSpec((None, B, dn1), lambda c, t: (c, 0, 0)),   # per-core partials
            pl.BlockSpec((None, B, de1), lambda c, t: (c, 0, 0)),
        ),
        scratch_shapes=[
            pltpu.VMEM((B, max(tile_n, tile_e)), jnp.int32),        # shared iota
        ],
        compiler_params=pltpu.CompilerParams(
            dimension_semantics=("parallel", "arbitrary"),
            vmem_limit_bytes=vmem_limit,
        ),
    )(nb_p, eb_p, x_p, ea_p)

    return pl.pallas_call(
        _combine_mlp_kernel,
        out_shape=jax.ShapeDtypeStruct((B, G), jnp.float32),
        grid=(1,),
        in_specs=[
            _full_spec(npart.shape), _full_spec(epart.shape),
            _full_spec(prepped["w1n"].shape), _full_spec(prepped["w1e"].shape),
            _full_spec(prepped["b1"].shape), _full_spec(prepped["w2"].shape),
            _full_spec(prepped["b2"].shape),
        ],
        out_specs=_full_spec((B, G)),
    )(npart, epart, prepped["w1n"], prepped["w1e"], prepped["b1"],
      prepped["w2"], prepped["b2"])


def _reference_forward(x, edge_index, edge_attr, batch, params, B):
    """Pure-JAX f32 reference of the module's eval-mode forward."""
    def scatter_mean(vals, ids):
        ssum = jnp.zeros((B, vals.shape[1]), jnp.float32).at[ids].add(vals)
        cnt = jnp.zeros((B,), jnp.float32).at[ids].add(1.0)
        return ssum / jnp.maximum(cnt, 1.0)[:, None]

    out = jnp.concatenate([scatter_mean(x, batch),
                           scatter_mean(edge_attr, batch[edge_index[0]])], axis=1)
    h = out @ params["w1"] + params["b1"]
    h = ((h - params["rm1"]) * lax.rsqrt(params["rv1"] + BN_EPS)
         * params["gamma1"] + params["beta1"])
    h = jnp.maximum(h, 0.0)
    return h @ params["w2"] + params["b2"]


if __name__ == "__main__":
    key = jax.random.PRNGKey(0)
    N, E, B = 300, 700, 4
    node_dim, edge_dim, hidden_dim, global_dim = 16, 16, 64, 32
    D_in = node_dim + edge_dim

    k = jax.random.split(key, 10)
    x = jax.random.normal(k[0], (N, node_dim), jnp.float32)
    edge_attr = jax.random.normal(k[1], (E, edge_dim), jnp.float32)
    edge_index = jax.random.randint(k[2], (2, E), 0, N, jnp.int32)
    batch = jnp.sort(jax.random.randint(k[3], (N,), 0, B, jnp.int32))
    u = jnp.zeros((B, global_dim), jnp.float32)

    def xavier_uniform(kk, shape):
        fan_in, fan_out = shape
        bound = (6.0 / (fan_in + fan_out)) ** 0.5
        return jax.random.uniform(kk, shape, jnp.float32, -bound, bound)

    # Linear weights xavier_uniform, biases 0.01 (init_weights); BatchNorm uses
    # non-trivial "trained" running stats/affine so the eval-mode fold is exercised.
    params = dict(
        w1=xavier_uniform(k[4], (D_in, hidden_dim)),
        b1=jnp.full((1, hidden_dim), 0.01, jnp.float32),
        gamma1=1.0 + 0.1 * jax.random.normal(k[6], (1, hidden_dim), jnp.float32),
        beta1=0.1 * jax.random.normal(k[7], (1, hidden_dim), jnp.float32),
        rm1=0.1 * jax.random.normal(k[8], (1, hidden_dim), jnp.float32),
        rv1=1.0 + 0.5 * jax.random.uniform(k[9], (1, hidden_dim), jnp.float32),
        w2=xavier_uniform(k[5], (hidden_dim, global_dim)),
        b2=jnp.full((1, global_dim), 0.01, jnp.float32),
    )

    prepped = prepare_params(params, node_dim)          # one-time: BN fold + W1 split
    ref = _reference_forward(x, edge_index, edge_attr, batch, params, B)

    # Multi-tile, 2-way-core-split configuration: exercises init/accumulate and
    # the parallel core axis (on 1-TC chips the core axis simply runs serially).
    out_small = global_model_forward(x, edge_index, edge_attr, u, batch, prepped, B,
                                     tile_n=128, tile_e=256, num_cores=2)
    # Production-style defaults: large streamed tiles, single reduction pass.
    out_big = global_model_forward(x, edge_index, edge_attr, u, batch, prepped, B)
    jax.block_until_ready((out_small, out_big))

    for out in (out_small, out_big):
        assert out.shape == (B, global_dim) and out.dtype == jnp.float32
        assert bool(jnp.all(jnp.isfinite(out)))
        assert bool(jnp.allclose(out, ref, atol=5e-2, rtol=5e-2)), \
            f"max abs err {float(jnp.max(jnp.abs(out - ref)))}"
    print("KERNEL_OK")
</pallas_src>

<mosaic_0001>
module attributes {stable_mosaic.version = 11 : i64} {
  func.func @_segment_sum_kernel(%arg0: i32, %arg1: i32, %arg2: memref<1x128xi32, #tpu.memory_space<vmem>>, %arg3: memref<1x256xi32, #tpu.memory_space<vmem>>, %arg4: memref<128x17xbf16, #tpu.memory_space<vmem>>, %arg5: memref<256x17xbf16, #tpu.memory_space<vmem>>, %arg6: memref<1x4x17xf32, #tpu.memory_space<vmem>>, %arg7: memref<1x4x17xf32, #tpu.memory_space<vmem>>, %arg8: memref<4x256xi32, #tpu.memory_space<vmem>>) attributes {dimension_semantics = [#tpu.dimension_semantics<parallel>, #tpu.dimension_semantics<arbitrary>], iteration_bounds = array<i64: 2, 2>, scalar_prefetch = 0 : i64, scratch_operands = 1 : i64, tpu.core_type = #tpu.core_type<tc>, window_params = [{transform_indices = @transform_0, window_bounds = array<i64: 1, 128>}, {transform_indices = @transform_1, window_bounds = array<i64: 1, 256>}, {transform_indices = @transform_2, window_bounds = array<i64: 128, 17>}, {transform_indices = @transform_3, window_bounds = array<i64: 256, 17>}, {transform_indices = @transform_4, window_bounds = array<i64: 1, 4, 17>}, {transform_indices = @transform_5, window_bounds = array<i64: 1, 4, 17>}]} {
    %c0_i32 = arith.constant 0 : i32
    %0 = arith.cmpi eq, %arg1, %c0_i32 : i32
    %1 = arith.extui %0 : i1 to i32
    %c0_i32_0 = arith.constant 0 : i32
    %2 = arith.cmpi ne, %1, %c0_i32_0 : i32
    scf.if %2 {
      %33 = tpu.iota {dimensions = array<i32: 0>} : vector<4x256xi32>
      %c0_25 = arith.constant 0 : index
      %c0_26 = arith.constant 0 : index
      %34 = vector.load %arg8[%c0_25, %c0_26] : memref<4x256xi32, #tpu.memory_space<vmem>>, vector<4x256xi32>
      tpu.vector_store %arg8[%c0_25, %c0_26], %33 {strides = array<i32>} : memref<4x256xi32, #tpu.memory_space<vmem>>, vector<4x256xi32>,
      %cst_27 = arith.constant 0.000000e+00 : f32
      %35 = vector.broadcast %cst_27 : f32 to vector<4x17xf32>
      %c0_28 = arith.constant 0 : index
      %c0_29 = arith.constant 0 : index
      %c0_30 = arith.constant 0 : index
      %36 = vector.load %arg6[%c0_28, %c0_29, %c0_30] : memref<1x4x17xf32, #tpu.memory_space<vmem>>, vector<1x4x17xf32>
      %37 = vector.shape_cast %36 : vector<1x4x17xf32> to vector<4x17xf32>
      %38 = vector.shape_cast %35 : vector<4x17xf32> to vector<1x4x17xf32>
      tpu.vector_store %arg6[%c0_28, %c0_29, %c0_30], %38 {strides = array<i32>} : memref<1x4x17xf32, #tpu.memory_space<vmem>>, vector<1x4x17xf32>,
      %cst_31 = arith.constant 0.000000e+00 : f32
      %39 = vector.broadcast %cst_31 : f32 to vector<4x17xf32>
      %c0_32 = arith.constant 0 : index
      %c0_33 = arith.constant 0 : index
      %c0_34 = arith.constant 0 : index
      %40 = vector.load %arg7[%c0_32, %c0_33, %c0_34] : memref<1x4x17xf32, #tpu.memory_space<vmem>>, vector<1x4x17xf32>
      %41 = vector.shape_cast %40 : vector<1x4x17xf32> to vector<4x17xf32>
      %42 = vector.shape_cast %39 : vector<4x17xf32> to vector<1x4x17xf32>
      tpu.vector_store %arg7[%c0_32, %c0_33, %c0_34], %42 {strides = array<i32>} : memref<1x4x17xf32, #tpu.memory_space<vmem>>, vector<1x4x17xf32>,
    } else {
    }
    %c0 = arith.constant 0 : index
    %c0_1 = arith.constant 0 : index
    %3 = vector.load %arg2[%c0, %c0_1] : memref<1x128xi32, #tpu.memory_space<vmem>>, vector<1x128xi32>
    %c0_2 = arith.constant 0 : index
    %c0_3 = arith.constant 0 : index
    %4 = vector.load %arg8[%c0_2, %c0_3] : memref<4x256xi32, #tpu.memory_space<vmem>>, vector<4x128xi32>
    %5 = vector.broadcast %3 : vector<1x128xi32> to vector<4x128xi32>
    %6 = arith.cmpi eq, %5, %4 : vector<4x128xi32>
    %7 = arith.extui %6 : vector<4x128xi1> to vector<4x128xi32>
    %8 = arith.sitofp %7 : vector<4x128xi32> to vector<4x128xf32>
    %9 = arith.truncf %8 : vector<4x128xf32> to vector<4x128xbf16>
    %c0_4 = arith.constant 0 : index
    %c0_5 = arith.constant 0 : index
    %c0_6 = arith.constant 0 : index
    %10 = vector.load %arg6[%c0_4, %c0_5, %c0_6] : memref<1x4x17xf32, #tpu.memory_space<vmem>>, vector<1x4x17xf32>
    %11 = vector.shape_cast %10 : vector<1x4x17xf32> to vector<4x17xf32>
    %c0_7 = arith.constant 0 : index
    %c0_8 = arith.constant 0 : index
    %12 = vector.load %arg4[%c0_7, %c0_8] : memref<128x17xbf16, #tpu.memory_space<vmem>>, vector<128x17xbf16>
    %cst = arith.constant dense<0.000000e+00> : vector<4x17xf32>
    %13 = tpu.matmul %9, %12, %cst {dimension_numbers = #tpu.dot_dimension_numbers<[1], [0], [0], [1], [0, 0, 1, 1], [], []>} : vector<4x128xbf16>, vector<128x17xbf16>, vector<4x17xf32> -> vector<4x17xf32>
    %14 = arith.addf %11, %13 : vector<4x17xf32>
    %c0_9 = arith.constant 0 : index
    %c0_10 = arith.constant 0 : index
    %c0_11 = arith.constant 0 : index
    %15 = vector.load %arg6[%c0_9, %c0_10, %c0_11] : memref<1x4x17xf32, #tpu.memory_space<vmem>>, vector<1x4x17xf32>
    %16 = vector.shape_cast %15 : vector<1x4x17xf32> to vector<4x17xf32>
    %17 = vector.shape_cast %14 : vector<4x17xf32> to vector<1x4x17xf32>
    tpu.vector_store %arg6[%c0_9, %c0_10, %c0_11], %17 {strides = array<i32>} : memref<1x4x17xf32, #tpu.memory_space<vmem>>, vector<1x4x17xf32>,
    %c0_12 = arith.constant 0 : index
    %c0_13 = arith.constant 0 : index
    %18 = vector.load %arg3[%c0_12, %c0_13] : memref<1x256xi32, #tpu.memory_space<vmem>>, vector<1x256xi32>
    %c0_14 = arith.constant 0 : index
    %c0_15 = arith.constant 0 : index
    %19 = vector.load %arg8[%c0_14, %c0_15] : memref<4x256xi32, #tpu.memory_space<vmem>>, vector<4x256xi32>
    %20 = vector.broadcast %18 : vector<1x256xi32> to vector<4x256xi32>
    %21 = arith.cmpi eq, %20, %19 : vector<4x256xi32>
    %22 = arith.extui %21 : vector<4x256xi1> to vector<4x256xi32>
    %23 = arith.sitofp %22 : vector<4x256xi32> to vector<4x256xf32>
    %24 = arith.truncf %23 : vector<4x256xf32> to vector<4x256xbf16>
    %c0_16 = arith.constant 0 : index
    %c0_17 = arith.constant 0 : index
    %c0_18 = arith.constant 0 : index
    %25 = vector.load %arg7[%c0_16, %c0_17, %c0_18] : memref<1x4x17xf32, #tpu.memory_space<vmem>>, vector<1x4x17xf32>
    %26 = vector.shape_cast %25 : vector<1x4x17xf32> to vector<4x17xf32>
    %c0_19 = arith.constant 0 : index
    %c0_20 = arith.constant 0 : index
    %27 = vector.load %arg5[%c0_19, %c0_20] : memref<256x17xbf16, #tpu.memory_space<vmem>>, vector<256x17xbf16>
    %cst_21 = arith.constant dense<0.000000e+00> : vector<4x17xf32>
    %28 = tpu.matmul %24, %27, %cst_21 {dimension_numbers = #tpu.dot_dimension_numbers<[1], [0], [0], [1], [0, 0, 1, 1], [], []>} : vector<4x256xbf16>, vector<256x17xbf16>, vector<4x17xf32> -> vector<4x17xf32>
    %29 = arith.addf %26, %28 : vector<4x17xf32>
    %c0_22 = arith.constant 0 : index
    %c0_23 = arith.constant 0 : index
    %c0_24 = arith.constant 0 : index
    %30 = vector.load %arg7[%c0_22, %c0_23, %c0_24] : memref<1x4x17xf32, #tpu.memory_space<vmem>>, vector<1x4x17xf32>
    %31 = vector.shape_cast %30 : vector<1x4x17xf32> to vector<4x17xf32>
    %32 = vector.shape_cast %29 : vector<4x17xf32> to vector<1x4x17xf32>
    tpu.vector_store %arg7[%c0_22, %c0_23, %c0_24], %32 {strides = array<i32>} : memref<1x4x17xf32, #tpu.memory_space<vmem>>, vector<1x4x17xf32>,
    return
  }
  func.func @transform_0(%arg0: i32, %arg1: i32) -> (i32, i32) {
    %c2_i32 = arith.constant 2 : i32
    %0 = arith.muli %arg0, %c2_i32 : i32
    %1 = arith.addi %0, %arg1 : i32
    %c0_i32 = arith.constant 0 : i32
    %c0_i32_0 = arith.constant 0 : i32
    return %c0_i32, %1 : i32, i32
  }
  func.func @transform_1(%arg0: i32, %arg1: i32) -> (i32, i32) {
    %c2_i32 = arith.constant 2 : i32
    %0 = arith.muli %arg0, %c2_i32 : i32
    %1 = arith.addi %0, %arg1 : i32
    %c0_i32 = arith.constant 0 : i32
    %c0_i32_0 = arith.constant 0 : i32
    return %c0_i32, %1 : i32, i32
  }
  func.func @transform_2(%arg0: i32, %arg1: i32) -> (i32, i32) {
    %c2_i32 = arith.constant 2 : i32
    %0 = arith.muli %arg0, %c2_i32 : i32
    %1 = arith.addi %0, %arg1 : i32
    %c0_i32 = arith.constant 0 : i32
    %c0_i32_0 = arith.constant 0 : i32
    return %1, %c0_i32 : i32, i32
  }
  func.func @transform_3(%arg0: i32, %arg1: i32) -> (i32, i32) {
    %c2_i32 = arith.constant 2 : i32
    %0 = arith.muli %arg0, %c2_i32 : i32
    %1 = arith.addi %0, %arg1 : i32
    %c0_i32 = arith.constant 0 : i32
    %c0_i32_0 = arith.constant 0 : i32
    return %1, %c0_i32 : i32, i32
  }
  func.func @transform_4(%arg0: i32, %arg1: i32) -> (i32, i32, i32) {
    %c0_i32 = arith.constant 0 : i32
    %c0_i32_0 = arith.constant 0 : i32
    %c0_i32_1 = arith.constant 0 : i32
    return %arg0, %c0_i32, %c0_i32_0 : i32, i32, i32
  }
  func.func @transform_5(%arg0: i32, %arg1: i32) -> (i32, i32, i32) {
    %c0_i32 = arith.constant 0 : i32
    %c0_i32_0 = arith.constant 0 : i32
    %c0_i32_1 = arith.constant 0 : i32
    return %arg0, %c0_i32, %c0_i32_0 : i32, i32, i32
  }
}

</mosaic_0001>

<bundles_post_ra>
// kernel: tpu_custom_call.1
= control target key start
LH: loop header
LB: loop body
LE: loop exit
PB: predicated region body
PF: predicated region fallthrough
CT: control target
= control target key end

     0   :  { %11 = vsyncpa [#allocation4], 0  ;;  %s1484_s0 = inlined_call_operand.vmem [shape: s32[1,512], index: 0, kind: input, shape index: {}]   ;;  %s1485_s1 = inlined_call_operand.vmem [shape: s32[1,1024], index: 1, kind: input, shape index: {}]   ;;  %s1486_s2 = inlined_call_operand.vmem [shape: bf16[512,17], index: 2, kind: input, shape index: {}]   ;;  %s1487_s3 = inlined_call_operand.vmem [shape: bf16[1024,17], index: 3, kind: input, shape index: {}]   ;;  %s1488_s4 = inlined_call_operand.hbm [shape: f32[2,4,17], index: 4, kind: output, shape index: {0}]   ;;  %s1489_s5 = inlined_call_operand.hbm [shape: f32[2,4,17], index: 5, kind: output, shape index: {1}]  }
   0x1   :  { %13 = vsyncpa [#allocation4 + $0x1], 0 }
   0x2   :  { %14 = vsyncpa [#allocation6], 0 }
   0x3   :  { %16 = vsyncpa [#allocation6 + $0x1], 0  ;;  %s1236_s18 = smov 0   ;;  %s1238_s19 = smov 0  }
   0x4   :  { %s1240_s20 = smov 0   ;;  %s1242_s21 = smov 0  }
   0x5   :  { %s1244_s22 = smov 0   ;;  %s1246_s23 = smov 0  }
   0x6   :  { %s1248_s24 = smov 0   ;;  %s1250_s25 = smov 0  }
   0x7 LB: > { %1495 = sst [smem:[#allocation9_spill]] %s1173_s19  ;;  %s849_s26 = sadd.s32 4294967295, %s1197_s25   ;;  %s1197_s25 = sphi %s1250_s25, %s22_s25   ;;  %s1193_s24 = sphi %s1248_s24, %s1511_s24   ;;  %s1189_s23 = sphi %s1246_s23, %s1510_s23   ;;  %s1185_s22 = sphi %s1244_s22, %s1509_s22   ;;  %s1181_s21 = sphi %s1242_s21, %s1508_s21   ;;  %s1177_s20 = sphi %s1240_s20, %s1507_s20   ;;  %s1173_s19 = sphi %s1238_s19, %s1506_s19   ;;  %s1169_s18 = sphi %s1236_s18, %s1505_s18  }
   0x8   : > { %1496 = sst [smem:[#allocation10_spill]] %s1177_s20  ;;  %s850_s27 = sadd.s32 4294967294, %s1197_s25  }
   0x9   : > { %1497 = sst [smem:[#allocation11_spill]] %s1189_s23  ;;  %s31_s28 = sadd.s32 1, %s1189_s23 }
   0xa   : > { %1498 = sst [smem:[#allocation12_spill]] %s1193_s24  ;;  %p32_p0 = scmp.ge.s32.totalorder %s31_s28, 2 }
   0xb   : > { %s34_s29 = sadd.s32 1, %s1193_s24  ;;  %p171_p1 = scmp.ne.s32.totalorder %s1177_s20, %s1173_s19 }
   0xc   : > { %p172_p2 = scmp.eq.s32.totalorder %s849_s26, 3  ;;  %s1513_s28 = smov (%p32_p0, %s31_s28), 0 }
   0xd   : > { %1499 = sst [smem:[#allocation13_spill]] %s1513_s28  ;;  %s1515_s29 = smov (!%p32_p0, %s34_s29), %s1193_s24 }
   0xe   : > { %p1285_p3 = por %p172_p2, %p171_p1  ;;  %p177_p4 = scmp.ne.s32.totalorder %s1173_s19, %s1169_s18 }
   0xf   : > { %p36_p5 = scmp.ge.s32.totalorder %s1515_s29, 2  ;;  %p178_p6 = scmp.eq.s32.totalorder %s850_s27, 3 }
  0x10   : > { %p861_p7 = scmp.ge.s32.totalorder %s1197_s25, 1  ;;  %p270_p8 = scmp.lt.s32.totalorder %s1197_s25, 5 }
  0x11   : > { %s1517_s29 = smov (%p36_p5, %s1515_s29), 0  ;;  %p1295_p9 = por %p178_p6, %p177_p4 }
  0x12   : > { %1501 = sst [smem:[#allocation14_spill]] %s1517_s29  ;;  %p271_p10 = pnand %p861_p7, %p270_p8 }
  0x13   : > { %s158_s7 = ssub.s32 %s1193_s24, %s1517_s29  ;;  %s161_s8 = sadd.s32 1, %s1177_s20 }
  0x14   : > { %p159_p11 = scmp.eq.s32.totalorder %s158_s7, 0  ;;  %274 = sbr.rel (%p271_p10) target bundleno = 329 (0x149), region = 36 }
  0x15   : > { %s1306_s10 = sand.u32 (!%p271_p10), 1, %s1173_s19   ;;  %s864_s11 = sshll.u32 (!%p271_p10), %s1185_s22, 1 }
  0x16   : > { %s1303_s9 = scalar_select %p159_p11, %s1177_s20, %s161_s8  }
  0x17   : > { %s862_s12 = sshll.u32 (!%p271_p10), %s1306_s10, 2  ;;  %s324_s13 = sadd.s32 (!%p271_p10), %s1181_s21, %s864_s11 }
  0x18   : > { %1503 = sst [smem:[#allocation15_spill]] %s1303_s9  ;;  %p325_p12 = scmp.lt.s32.totalorder (!%p271_p10), %s324_s13, 3 }
  0x19   : > { %s866_s14 = sshll.u32 (!%p271_p10), %s324_s13, 1  ;;  %s868_s15 = sshll.u32 (!%p271_p10), %s324_s13, 4 }
  0x1a   : > { %p333_p13 = scmp.lt.s32.totalorder (!%p271_p10), %s866_s14, 7  ;;  %p342_p0 = scmp.lt.s32.totalorder (!%p271_p10), %s868_s15, 63 }
  0x1b   : > { %s1311_s16 = scalar_select %p325_p12, %s324_s13, 3 }
  0x1c   : > { %s1519_s14 = smov (!%p333_p13, %s866_s14), 7  ;;  %s871_s11 = sshll.u32 %s324_s13, 5 }
  0x1d   : > { %s335_s29 = scalar_lea.vmem %s1485_s1, %s1519_s14  ;;  %s1521_s15 = smov (!%p342_p0, %s868_s15), 63 }
  0x1e   : > { %p352_p1 = scmp.lt.s32.totalorder %s871_s11, 127  ;;  %s869_s28 = sshll.u32 %s1521_s15, 2 }
  0x1f   : > { %s1326_s9 = scalar_lea.vmem %s1486_s2, %s869_s28  ;;  %s1333_s27 = scalar_lea.vmem [#allocation3], %s862_s12 }
  0x20   : > { %s1523_s11 = smov (!%p352_p1, %s871_s11), 127  ;;  %s1335_s7 = scalar_lea.vmem [#allocation5], %s862_s12 }
  0x21   : > { %s872_s20 = sshll.u32 %s1523_s11, 2  ;;  %p873_p2 = scmp.ne.s32.totalorder %s1181_s21, 0 }
  0x22   : > { %s1331_s26 = scalar_lea.vmem %s1487_s3, %s872_s20  ;;  %v364_v0 = vlaneseq (!%p873_p2)  ;;  %vm374_vm0 = vcmask (!%p873_p2), 134144   ;;  %v1199_v1 = vmov (!%p873_p2), 839922192   ;;  %v1200_v3 = vmov (!%p873_p2), 0.0  }
  0x23   : > { %363 = sbr.rel (%p873_p2) target bundleno = 44 (0x2c), region = 40  ;;  %v367_v2 = vunpack.c.l.s4 (!%p873_p2), %v1199_v1  ;;  %375 = vst.msk [vmem:[%s1333_s27] sm:$0xf] (!%p873_p2), %vm374_vm0, %v1200_v3  ;;  %376 = vst.msk [vmem:[%s1335_s7] sm:$0xf] (!%p873_p2), %vm374_vm0, %v1200_v3 }
  0x24   : > { %v365_v4 = vshrl.u32 (!%p873_p2), %v364_v0, 7 }
  0x25   : > { %v368_v5 = vunpack.c.0.s8 (!%p873_p2), %v367_v2 }
  0x27   : > { %v371_v6 = vsub.s32 (!%p873_p2), %v368_v5, %v365_v4 }
  0x29   : > { %v372_v7 = vrot.slane (!%p873_p2), %v365_v4, %v371_v6 }
  0x2b   : > { %373 = vst [vmem:[#allocation2] sm:$0xff] %v372_v7 }
  0x2c PF: > { %v1046_v8 = vld [vmem:[%s1331_s26 + $0x40] sm:$0xff]   ;;  %v1201_v9 = vmov 0.0   ;;  %vm1202_vm1 = vmmov 0   ;;  %v1049_v12 = vld [vmem:[%s1331_s26 + $0x48] sm:$0xff]   ;;  %v1052_v15 = vld [vmem:[%s1331_s26 + $0x50] sm:$0xff]   ;;  %v497_v21 = vlaneseq  ;;  %s1504_s24 = scalar_lea.vmem %s1484_s0, %s1311_s16  ;;  %s910_s28 = sshll.u32 %s1185_s22, 6 }
  0x2d   : > { %945 = vmatprep.subr.bf16.mxu0 %v1201_v9  ;;  %v1047_v10 = vld [vmem:[%s1326_s9] sm:$0xff]   ;;  %923 = vmatprep.subr.bf16.mxu1 %v1046_v8  ;;  %v1050_v13 = vld [vmem:[%s1326_s9 + $0x8] sm:$0xff]   ;;  %v1053_v16 = vld [vmem:[%s1326_s9 + $0x10] sm:$0xff]   ;;  %v1203_v44 = vmov 1.0|1.0   ;;  %vm493_vm8 = vcmask 134144   ;;  %s1391_s13 = scalar_lea.hbm %s1488_s4, %s910_s28 }
  0x2e   : > { %v1048_v11 = vld [vmem:[%s1331_s26] sm:$0xff]   ;;  %961 = vmatprep.mubr.msk.bf16.mxu0 %vm1202_vm1, %v1201_v9  ;;  %946 = vmatpush3.bf16.msra.mxu0 %v1047_v10  ;;  %v1051_v14 = vld [vmem:[%s1331_s26 + $0x8] sm:$0xff]   ;;  %v1054_v17 = vld [vmem:[%s1331_s26 + $0x10] sm:$0xff]   ;;  %v498_v25 = vshrl.u32 %v497_v21, 7  ;;  %s717_s14 = sshll.u32 %s1335_s7, 4  ;;  %s686_s15 = scalar_lea.sflag [#allocation4], %s1306_s10  ;;  %s1430_s14 = int_to_ptr.vmem [resolvable:$true] %s717_s14 }
  0x2f   : > { %924 = vmatpush3.bf16.msra.mxu1 %v1048_v11  ;;  %947 = vmatprep.subr.bf16.mxu0 %v1201_v9  ;;  %v1055_v18 = vld [vmem:[%s1331_s26 + $0x58] sm:$0xff]   ;;  %v1058_v22 = vld [vmem:[%s1331_s26 + $0x60] sm:$0xff]   ;;  %v1061_v26 = vld [vmem:[%s1331_s26 + $0x68] sm:$0xff]   ;;  %s1204_s8 = smov [#allocation3]  }
  0x30   : > { %925 = vmatprep.subr.bf16.mxu1 %v1049_v12  ;;  %v1056_v19 = vld [vmem:[%s1326_s9 + $0x18] sm:$0xff]   ;;  %v1059_v23 = vld [vmem:[%s1326_s9 + $0x20] sm:$0xff]   ;;  %v1062_v27 = vld [vmem:[%s1326_s9 + $0x28] sm:$0xff]   ;;  %v499_v29 = vsub.s32 0, %v498_v25  ;;  %v503_v31 = vsub.s32 1, %v498_v25  ;;  %s1075_s11 = sshll.u32 %s1204_s8, 4  ;;  %s1076_s11 = int_to_ptr.vmem [resolvable:$false] %s1075_s11 }
  0x31   : > { %v1057_v20 = vld [vmem:[%s1331_s26 + $0x18] sm:$0xff]   ;;  %v1060_v24 = vld [vmem:[%s1331_s26 + $0x20] sm:$0xff]   ;;  %v1063_v28 = vld [vmem:[%s1331_s26 + $0x28] sm:$0xff]   ;;  %s1077_s17 = scalar_lea.vmem %s1076_s11, 128 }
  0x32   : > { %948 = vmatpush3.bf16.msra.mxu0 %v1050_v13  ;;  %v1064_v30 = vld [vmem:[%s1331_s26 + $0x70] sm:$0xff]   ;;  %v495_v34 = vld [vmem:[%s335_s29] sm:$0x3]  ;;  %v1067_v36 = vld [vmem:[%s1331_s26 + $0x78] sm:$0xff]   ;;  %s704_s29 = sshll.u32 %s1333_s27, 4  ;;  %s1393_s29 = int_to_ptr.vmem [resolvable:$true] %s704_s29 }
  0x33   : > { %926 = vmatpush3.bf16.msra.mxu1 %v1051_v14  ;;  %949 = vmatprep.subr.bf16.mxu0 %v1201_v9  ;;  %v1065_v32 = vld [vmem:[%s1326_s9 + $0x30] sm:$0xff]   ;;  %v496_v35 = vld [vmem:[#allocation2] sm:$0xff]  ;;  %v500_v37 = vrot.slane %v495_v34, %v499_v29  ;;  %v504_v38 = vrot.slane %v495_v34, %v503_v31  ;;  %v1068_v42 = vld [vmem:[%s1326_s9 + $0x38] sm:$0xff]   ;;  %s1071_s16 = scalar_lea.vmem %s1393_s29, 64  ;;  %p1078_p7 = scmp.lt.s32.totalorder %s1393_s29, %s1076_s11 }
  0x34   : > { %927 = vmatprep.subr.bf16.mxu1 %v1052_v15  ;;  %v1066_v33 = vld [vmem:[%s1331_s26 + $0x30] sm:$0xff]   ;;  %v505_v39 = vcombine.high %v496_v35, %v496_v35  ;;  %v874_v40 = vld [vmem:[%s1504_s24] ss:$0 sm:$0xff]  ;;  %v1069_v43 = vld [vmem:[%s1331_s26 + $0x38] sm:$0xff]   ;;  %p1072_p4 = scmp.ne.s32.totalorder %s1393_s29, %s1071_s16  ;;  %p1079_p8 = scmp.lt.s32.totalorder %s1077_s17, %s1071_s16 }
  0x35   : > { %v378_v41 = vld [vmem:[#allocation2] sm:$0xf]  ;;  %vm506_vm5 = vcmp.eq.s32.totalorder %v500_v37, %v496_v35  ;;  %v387_v45 = vld [vmem:[%s1333_s27] sm:$0xf]  ;;  %v514_v50 = vld [vmem:[%s1335_s7] sm:$0xf] }
  0x36   : > { %950 = vmatpush3.bf16.msra.mxu0 %v1053_v16  ;;  %vm507_vm2 = vcmp.eq.s32.totalorder %v504_v38, %v505_v39  ;;  %vm383_vm4 = vcmp.eq.s32.totalorder %v874_v40, %v378_v41  ;;  %vm906_vm7 = vmpackc.low %vm506_vm5, %vm506_vm5  ;;  %p1073_p5 = pnand %p1072_p4, %p1285_p3  ;;  %p1080_p10 = por %p1079_p8, %p1078_p7 }
  0x37   : > { %928 = vmatpush3.bf16.msra.mxu1 %v1054_v17  ;;  %951 = vmatprep.subr.bf16.mxu0 %v1201_v9  ;;  %vm904_vm3 = vmpackc.low %vm507_vm2, %vm507_vm2 }
  0x38   : > { %929 = vmatprep.subr.bf16.mxu1 %v1055_v18  ;;  %905 = vmatprep.mubr.msk.bf16.mxu1 %vm904_vm3, %v1203_v44  ;;  %vm884_vm6 = vmpackc.low %vm383_vm4, %vm383_vm4  ;;  %p1074_p6 = pneg %p1073_p5 }
  0x3a   : > { %952 = vmatpush3.bf16.msra.mxu0 %v1056_v19  ;;  %p1081_p11 = pnand %p1080_p10, %p1074_p6 }
  0x3b   : > { %930 = vmatpush3.bf16.msra.mxu1 %v1057_v20  ;;  %953 = vmatprep.subr.bf16.mxu0 %v1201_v9 }
  0x3c   : > { %931 = vmatprep.subr.bf16.mxu1 %v1058_v22 }
  0x3e   : > { %954 = vmatpush3.bf16.msra.mxu0 %v1059_v23 }
  0x3f   : > { %932 = vmatpush3.bf16.msra.mxu1 %v1060_v24  ;;  %955 = vmatprep.subr.bf16.mxu0 %v1201_v9 }
  0x40   : > { %933 = vmatprep.subr.bf16.mxu1 %v1061_v26 }
  0x42   : > { %956 = vmatpush3.bf16.msra.mxu0 %v1062_v27 }
  0x43   : > { %934 = vmatpush3.bf16.msra.mxu1 %v1063_v28  ;;  %957 = vmatprep.subr.bf16.mxu0 %v1201_v9 }
  0x44   : > { %935 = vmatprep.subr.bf16.mxu1 %v1064_v30 }
  0x46   : > { %958 = vmatpush3.bf16.msra.mxu0 %v1065_v32 }
  0x47   : > { %936 = vmatpush3.bf16.msra.mxu1 %v1066_v33  ;;  %959 = vmatprep.subr.bf16.mxu0 %v1201_v9 }
  0x48   : > { %937 = vmatprep.subr.bf16.mxu1 %v1067_v36 }
  0x4a   : > { %960 = vmatpush3.bf16.msra.mxu0 %v1068_v42 }
  0x4b   : > { %938 = vmatpush3.bf16.msra.mxu1 %v1069_v43 }
  0x4d   : > { %962 = vmatmul.mubr.msk.bf16.vlgmr.msra.gmra.mrb[0].mxu0 %vm884_vm6, %v1203_v44 }
  0x4e   : > { %907 = vmatmul.mubr.msk.bf16.vlgmr.msra.gmra.mrb[0].mxu1 %vm906_vm7, %v1203_v44 }
 0x120   : > { %v486_v46 = vpop.f32.mrb[0].mxu0 }
 0x121   : > { %v492_v47 = vadd.f32 %v486_v46, %v387_v45  ;;  %v939_v48 = vpop.f32.mrb[0].mxu1  ;;  %v963_v49 = vpop.f32.mrb[1].mxu0 }
 0x122   : > { %v940_v51 = vpop.f32.mrb[1].mxu1  ;;  %v489_v52 = vpop.f32.mrb[2].mxu0 }
 0x123   : > { %v941_v53 = vadd.f32 %v940_v51, %v939_v48  ;;  %v942_v54 = vpop.f32.mrb[2].mxu1  ;;  %v964_v55 = vpop.f32.mrb[3].mxu0  ;;  %494 = vst.msk [vmem:[%s1333_s27] sm:$0xf] %vm493_vm8, %v492_v47 }
 0x124   : > { %v943_v56 = vpop.f32.mrb[3].mxu1 }
 0x125   : > { %1084 = shalt.err (!%p1081_p11)
}
 0x126   : > { %s1085_s27 = scalar_lea.hbm %s1391_s13, 64  ;;  %s1089_s20 = scalar_lea.hbm %s1488_s4, 128 }
 0x127   : > { %p1086_p12 = scmp.ne.s32.totalorder %s1391_s13, %s1085_s27  ;;  %p1090_p1 = scmp.lt.u32.totalorder %s1391_s13, %s1488_s4 }
 0x128   : > { %p1091_p2 = scmp.lt.u32.totalorder %s1089_s20, %s1085_s27  ;;  %p1093_p5 = scmp.lt.u32.totalorder %s1085_s27, %s1391_s13 }
 0x129   : > { %p1087_p13 = pnand %p1086_p12, %p1285_p3 }
 0x12a   : > { %p1092_p4 = por %p1091_p2, %p1090_p1 }
 0x12b   : > { %p1088_p0 = pneg %p1087_p13 }
 0x12c   : > { %p1094_p6 = por %p1093_p5, %p1092_p4 }
 0x12e   : > { %p1095_p7 = pnand %p1094_p6, %p1088_p0 }
 0x130   : > { %1098 = shalt.err (!%p1095_p7)
}
 0x131   : > { %965 = dma.vmem_to_hbm [thread:$0]  (%p1285_p3), %s1393_s29, 64, %s1391_s13, %s686_s15   ;;  %v683_v57 = vadd.f32 %v941_v53, %v514_v50 }
 0x132   : > { %s1426_s12 = scalar_lea.hbm %s1489_s5, %s910_s28  ;;  %s691_s16 = scalar_lea.sflag [#allocation6], %s1306_s10 }
 0x133   : > { %684 = vst.msk [vmem:[%s1335_s7] sm:$0xf] %vm493_vm8, %v683_v57  ;;  %s1099_s8 = scalar_lea.vmem %s1430_s14, 64  ;;  %s1205_s22 = smov [#allocation5]  }
 0x134   : > { %p1100_p8 = scmp.ne.s32.totalorder %s1430_s14, %s1099_s8  ;;  %s1103_s29 = sshll.u32 %s1205_s22, 4  ;;  %s1104_s29 = int_to_ptr.vmem [resolvable:$false] %s1103_s29 }
 0x135   : > { %s1105_s13 = scalar_lea.vmem %s1104_s29, 128  ;;  %p1106_p12 = scmp.lt.s32.totalorder %s1430_s14, %s1104_s29 }
 0x136   : > { %p1101_p10 = pnand %p1100_p8, %p1285_p3  ;;  %p1107_p13 = scmp.lt.s32.totalorder %s1105_s13, %s1099_s8 }
 0x138   : > { %p1102_p11 = pneg %p1101_p10  ;;  %p1108_p0 = por %p1107_p13, %p1106_p12 }
 0x13a   : > { %p1109_p1 = pnand %p1108_p0, %p1102_p11 }
 0x13c   : > { %1112 = shalt.err (!%p1109_p1)
}
 0x13d   : > { %s1113_s10 = scalar_lea.hbm %s1426_s12, 64  ;;  %s1117_s15 = scalar_lea.hbm %s1489_s5, 128 }
 0x13e   : > { %p1114_p2 = scmp.ne.s32.totalorder %s1426_s12, %s1113_s10  ;;  %p1118_p6 = scmp.lt.u32.totalorder %s1426_s12, %s1489_s5 }
 0x13f   : > { %p1119_p7 = scmp.lt.u32.totalorder %s1117_s15, %s1113_s10  ;;  %p1121_p10 = scmp.lt.u32.totalorder %s1113_s10, %s1426_s12 }
 0x140   : > { %p1115_p4 = pnand %p1114_p2, %p1285_p3 }
 0x141   : > { %p1120_p8 = por %p1119_p7, %p1118_p6 }
 0x142   : > { %p1116_p5 = pneg %p1115_p4 }
 0x143   : > { %p1122_p11 = por %p1121_p10, %p1120_p8 }
 0x145   : > { %p1123_p12 = pnand %p1122_p11, %p1116_p5 }
 0x147   : > { %1126 = shalt.err (!%p1123_p12)
}
 0x148   : > { %966 = dma.vmem_to_hbm [thread:$0]  (%p1285_p3), %s1430_s14, 64, %s1426_s12, %s691_s16  }
 0x149 PF: > { %p976_p13 = scmp.ge.s32.totalorder %s1197_s25, 2  ;;  %s729_s27 = sand.u32 1, %s1169_s18  }
 0x14a   : > { %s730_s26 = scalar_lea.sflag [#allocation4], %s729_s27 }
 0x14b   : > { %p970_p0 = pnand %p976_p13, %p1295_p9 }
 0x14d   : > { %1160 = dma.done.wait (!%p970_p0), %s730_s26, 64  }
 0x14e   : > { %1162 = vsyncadd (!%p970_p0), %s730_s26, 4294967232  ;;  %s739_s19 = scalar_lea.sflag [#allocation6], %s729_s27 }
 0x14f   : > { %1164 = dma.done.wait (!%p970_p0), %s739_s19, 64  }
 0x150   : > { %1166 = vsyncadd (!%p970_p0), %s739_s19, 4294967232  ;;  %s22_s25 = sadd.s32 1, %s1197_s25   ;;  %s1505_s18 = sld [smem:[#allocation9_spill]] }
 0x151   : > { %p19_p1 = scmp.ge.s32.totalorder %s22_s25, 6   ;;  %s1506_s19 = sld [smem:[#allocation10_spill]] }
 0x152   : > { %s1507_s20 = sld [smem:[#allocation15_spill]]  ;;  %s1508_s21 = sld [smem:[#allocation11_spill]] }
 0x153   : > { %s1509_s22 = sld [smem:[#allocation12_spill]]  ;;  %s1510_s23 = sld [smem:[#allocation13_spill]] }
 0x154   : > { %s1511_s24 = sld [smem:[#allocation14_spill]]  ;;  %21 = sbr.rel (!%p19_p1) target bundleno = 7 (0x7), region = 101 }
 0x15b   :  { %744 = vsyncpa [#allocation4], 1 }
 0x15c   :  { %746 = vsyncpa [#allocation4 + $0x1], 1 }
 0x15d   :  { %747 = vsyncpa [#allocation6], 1 }
 0x15e   :  { %749 = vsyncpa [#allocation6 + $0x1], 1 }

</bundles_post_ra>
